<compile_context>
chip_gen: v5e
topology: v5e:2x2
jax: 0.10.0
libtpu: 0.0.40
codegen_flags: <defaults>
</compile_context>

<pallas_src>
import math
from functools import partial

import jax
import jax.numpy as jnp
from jax import lax
from jax.experimental import pallas as pl
from jax.experimental.pallas import tpu as pltpu


# ----------------------------- helpers -----------------------------
def _pick_tile(dim, candidates):
    """Largest candidate tile that evenly divides dim; else the full dim."""
    for c in candidates:
        if c <= dim and dim % c == 0:
            return c
    return dim


# ----------------------------- fused q/k/v projection (HF c_attn) -----------------------------
def _qkv_proj_kernel(x_ref, wq_ref, wk_ref, wv_ref, bq_ref, bk_ref, bv_ref,
                     q_ref, k_ref, v_ref, accq, acck, accv):
    kk = pl.program_id(2)

    @pl.when(kk == 0)
    def _():
        accq[...] = jnp.zeros_like(accq)
        acck[...] = jnp.zeros_like(acck)
        accv[...] = jnp.zeros_like(accv)

    x = x_ref[...]  # bf16 (tm, tk), read once, drives all three dots
    accq[...] += jnp.dot(x, wq_ref[...], preferred_element_type=jnp.float32)
    acck[...] += jnp.dot(x, wk_ref[...], preferred_element_type=jnp.float32)
    accv[...] += jnp.dot(x, wv_ref[...], preferred_element_type=jnp.float32)

    @pl.when(kk == pl.num_programs(2) - 1)
    def _():
        q_ref[...] = (accq[...] + bq_ref[...]).astype(q_ref.dtype)
        k_ref[...] = (acck[...] + bk_ref[...]).astype(k_ref.dtype)
        v_ref[...] = (accv[...] + bv_ref[...]).astype(v_ref.dtype)


def qkv_project(x, wq, wk, wv, bq, bk, bv, out_dtype=jnp.bfloat16):
    """c_attn split into q/k/v heads of the same tiled matmul: y_i = x @ w_i + b_i."""
    M, K = x.shape
    D = wq.shape[1]

    # Row padding keeps the M-tiler from silently falling back to one huge block.
    pad = (-M) % 8
    Mp = M + pad
    if pad:
        x = jnp.pad(x, ((0, pad), (0, 0)))

    tm = _pick_tile(Mp, (512, 256, 128, 64, 32, 16, 8))
    tn = _pick_tile(D, (512, 256, 128))
    tk = _pick_tile(K, (768, 512, 256, 128))

    w_spec = pl.BlockSpec((tk, tn), lambda i, j, k: (k, j))
    b_spec = pl.BlockSpec((1, tn), lambda i, j, k: (0, j))
    o_spec = pl.BlockSpec((tm, tn), lambda i, j, k: (i, j))
    out_sds = jax.ShapeDtypeStruct((Mp, D), out_dtype)

    q, k, v = pl.pallas_call(
        _qkv_proj_kernel,
        out_shape=(out_sds, out_sds, out_sds),
        grid_spec=pltpu.PrefetchScalarGridSpec(
            num_scalar_prefetch=0,
            grid=(Mp // tm, D // tn, K // tk),
            in_specs=[
                pl.BlockSpec((tm, tk), lambda i, j, k: (i, k)),
                w_spec, w_spec, w_spec,
                b_spec, b_spec, b_spec,
            ],
            out_specs=(o_spec, o_spec, o_spec),
            scratch_shapes=[
                pltpu.VMEM((tm, tn), jnp.float32),
                pltpu.VMEM((tm, tn), jnp.float32),
                pltpu.VMEM((tm, tn), jnp.float32),
            ],
        ),
        compiler_params=pltpu.CompilerParams(
            dimension_semantics=("parallel", "parallel", "arbitrary"),
            vmem_limit_bytes=40 * 1024 * 1024,  # sized for v7x's 64 MiB VMEM
        ),
    )(x.astype(jnp.bfloat16), wq, wk, wv,
      bq.reshape(1, D), bk.reshape(1, D), bv.reshape(1, D))

    if pad:
        q, k, v = q[:M], k[:M], v[:M]
    return q, k, v


# ----------------------------- fused attention + c_proj -----------------------------
def _attn_cproj_kernel(q_ref, k_ref, v_ref, wp_ref, bp_ref, o_ref,
                       attn_scr, acc_ref, *, heads_per_group, head_dim):
    # q_ref: (1, tq, gw) bf16 (scale already folded into the q projection)
    # k_ref/v_ref: (1, T, gw) bf16 ; wp_ref: (gw, D) bf16 ; bp_ref: (1, D) f32
    # o_ref: (1, tq, D) ; attn_scr: (tq, gw) f32 ; acc_ref: (tq, D) f32
    g = pl.program_id(2)

    @pl.when(g == 0)
    def _():
        acc_ref[...] = jnp.zeros_like(acc_ref)

    tq = q_ref.shape[1]
    T = k_ref.shape[1]
    q0 = pl.program_id(1) * tq
    # Causal mask for this query tile, built once and reused by every head.
    row = lax.broadcasted_iota(jnp.int32, (tq, T), 0) + q0
    col = lax.broadcasted_iota(jnp.int32, (tq, T), 1)
    causal = col <= row
    neg = jnp.float32(jnp.finfo(jnp.float32).min)

    # Small static loop over the heads of this group (2 for GPT-2's hd=64).
    # TODO(synk): for very long T, replace the full-K score row with a KV-tiled
    # online-softmax (flash) loop and skip fully-masked causal KV blocks.
    for h in range(heads_per_group):
        lo = h * head_dim
        hi = lo + head_dim
        q = q_ref[0, :, lo:hi]                 # (tq, hd) bf16
        k = k_ref[0, :, lo:hi]                 # (T, hd) bf16
        v = v_ref[0, :, lo:hi]                 # (T, hd) bf16
        # Q @ K^T without an explicit transpose: contract last dims of both.
        s = lax.dot_general(q, k, (((1,), (1,)), ((), ())),
                            preferred_element_type=jnp.float32)
        s = jnp.where(causal, s, neg)
        s = s - jnp.max(s, axis=-1, keepdims=True)
        p = jnp.exp(s)
        # Normalize via EUP approximate reciprocal instead of a VALU divide.
        p = p * pl.reciprocal(jnp.sum(p, axis=-1, keepdims=True), approx=True)
        # attn_dropout is identity in eval mode.
        a = jnp.dot(p.astype(v.dtype), v, preferred_element_type=jnp.float32)
        attn_scr[:, lo:hi] = a

    # Fused partial c_proj for this head group's columns, accumulated over groups.
    acc_ref[...] += jnp.dot(attn_scr[...].astype(wp_ref.dtype), wp_ref[...],
                            preferred_element_type=jnp.float32)

    @pl.when(g == pl.num_programs(2) - 1)
    def _():
        # Single lane-dense (tq, D) store per (batch, query-tile).
        o_ref[0] = (acc_ref[...] + bp_ref[...]).astype(o_ref.dtype)


def attention_cproj(q, k, v, w_proj, b_proj, num_heads, out_dtype):
    B, T, D = q.shape
    hd = D // num_heads

    # Head-group width: a multiple of 128 lanes when possible, else the full D
    # (always a legal last-dim block; keeps I/O lane-dense for GPT-2's hd=64).
    if hd % 128 == 0:
        hg = 1
    elif (128 % hd == 0) and (D % 128 == 0):
        hg = 128 // hd
    else:
        hg = num_heads
    gw = hg * hd
    num_groups = num_heads // hg

    tq = _pick_tile(T, (512, 256, 128))

    kernel = partial(_attn_cproj_kernel, heads_per_group=hg, head_dim=hd)
    return pl.pallas_call(
        kernel,
        out_shape=jax.ShapeDtypeStruct((B, T, D), out_dtype),
        grid_spec=pltpu.PrefetchScalarGridSpec(
            num_scalar_prefetch=0,
            grid=(B, T // tq, num_groups),
            in_specs=[
                pl.BlockSpec((1, tq, gw), lambda b, qi, g: (b, qi, g)),
                pl.BlockSpec((1, T, gw), lambda b, qi, g: (b, 0, g)),
                pl.BlockSpec((1, T, gw), lambda b, qi, g: (b, 0, g)),
                pl.BlockSpec((gw, D), lambda b, qi, g: (g, 0)),
                pl.BlockSpec((1, D), lambda b, qi, g: (0, 0)),
            ],
            out_specs=pl.BlockSpec((1, tq, D), lambda b, qi, g: (b, qi, 0)),
            scratch_shapes=[
                pltpu.VMEM((tq, gw), jnp.float32),   # per-group attention output
                pltpu.VMEM((tq, D), jnp.float32),    # fused c_proj accumulator
            ],
        ),
        compiler_params=pltpu.CompilerParams(
            dimension_semantics=("parallel", "parallel", "arbitrary"),
            vmem_limit_bytes=40 * 1024 * 1024,  # sized for v7x's 64 MiB VMEM
        ),
    )(q, k, v, w_proj, b_proj.reshape(1, D).astype(jnp.float32))


# ----------------------------- full forward pass -----------------------------
def gpt2_attention_forward(hidden_states, params, num_heads):
    """GPT2Attention.forward: self-attention, no layer_past/masks, use_cache=False,
    dropout in eval mode, reorder_and_upcast_attn=False."""
    B, T, D = hidden_states.shape
    hd = D // num_heads
    scale = 1.0 / math.sqrt(hd)  # scale_attn_weights=True; layer_idx scaling off

    # Split the fused c_attn weight, fold the attention scale into the q
    # projection (free numerics change), cast MXU operands to bf16 once.
    w_attn = params["w_attn"]
    b_attn = params["b_attn"]
    wq = (w_attn[:, :D] * scale).astype(jnp.bfloat16)
    wk = w_attn[:, D:2 * D].astype(jnp.bfloat16)
    wv = w_attn[:, 2 * D:].astype(jnp.bfloat16)
    bq = (b_attn[:D] * scale).astype(jnp.float32)
    bk = b_attn[D:2 * D].astype(jnp.float32)
    bv = b_attn[2 * D:].astype(jnp.float32)

    q, k, v = qkv_project(hidden_states.reshape(B * T, D), wq, wk, wv, bq, bk, bv)
    q = q.reshape(B, T, D)
    k = k.reshape(B, T, D)
    v = v.reshape(B, T, D)

    # Fused attention + c_proj; resid_dropout is identity in eval mode.
    out = attention_cproj(
        q, k, v,
        params["w_proj"].astype(jnp.bfloat16),
        params["b_proj"],
        num_heads=num_heads,
        out_dtype=hidden_states.dtype,
    )
    # TODO(synk): attn/resid dropout, layer_past / use_cache, attention_mask /
    # head_mask, output_attentions and the cross-attention branch are identity /
    # unused in this eval-mode forward and are not kernelized.
    return out


# ----------------------------- pure-JAX reference (for sanity) -----------------------------
def _reference(hidden_states, params, num_heads):
    B, T, D = hidden_states.shape
    hd = D // num_heads
    qkv = hidden_states @ params["w_attn"] + params["b_attn"]
    q, k, v = jnp.split(qkv, 3, axis=-1)

    def sh(t):
        return t.reshape(B, T, num_heads, hd).transpose(0, 2, 1, 3)

    q, k, v = sh(q), sh(k), sh(v)
    w = jnp.einsum("bhqd,bhkd->bhqk", q, k) / math.sqrt(hd)
    mask = jnp.tril(jnp.ones((T, T), dtype=bool))
    w = jnp.where(mask[None, None], w, jnp.finfo(jnp.float32).min)
    w = jax.nn.softmax(w, axis=-1)
    a = jnp.einsum("bhqk,bhkd->bhqd", w, v)
    a = a.transpose(0, 2, 1, 3).reshape(B, T, D)
    return a @ params["w_proj"] + params["b_proj"]


if __name__ == "__main__":
    B, T, D, H = 2, 8, 32, 4  # batch, seq, hidden, heads (head_dim = 8)

    key = jax.random.PRNGKey(0)
    k1, k2, k3, k4, k5 = jax.random.split(key, 5)
    x = jax.random.normal(k1, (B, T, D), dtype=jnp.float32)
    params = {
        "w_attn": 0.02 * jax.random.normal(k2, (D, 3 * D), dtype=jnp.float32),
        "b_attn": 0.01 * jax.random.normal(k3, (3 * D,), dtype=jnp.float32),
        "w_proj": 0.02 * jax.random.normal(k4, (D, D), dtype=jnp.float32),
        "b_proj": 0.01 * jax.random.normal(k5, (D,), dtype=jnp.float32),
    }

    out = gpt2_attention_forward(x, params, H)
    out = jax.block_until_ready(out)

    ref = _reference(x, params, H)
    assert out.shape == (B, T, D)
    # Loose tolerance: bf16 MXU operands + approximate reciprocal in the softmax
    # normalization (per review: acceptable for eval-mode parity).
    assert jnp.allclose(out.astype(jnp.float32), ref, atol=2e-2, rtol=2e-2), \
        "mismatch vs reference"

    print("KERNEL_OK")
</pallas_src>

<mosaic_0001>
module attributes {stable_mosaic.version = 11 : i64} {
  func.func @_qkv_proj_kernel(%arg0: i32, %arg1: i32, %arg2: i32, %arg3: memref<16x32xbf16, #tpu.memory_space<vmem>>, %arg4: memref<32x32xbf16, #tpu.memory_space<vmem>>, %arg5: memref<32x32xbf16, #tpu.memory_space<vmem>>, %arg6: memref<32x32xbf16, #tpu.memory_space<vmem>>, %arg7: memref<1x32xf32, #tpu.memory_space<vmem>>, %arg8: memref<1x32xf32, #tpu.memory_space<vmem>>, %arg9: memref<1x32xf32, #tpu.memory_space<vmem>>, %arg10: memref<16x32xbf16, #tpu.memory_space<vmem>>, %arg11: memref<16x32xbf16, #tpu.memory_space<vmem>>, %arg12: memref<16x32xbf16, #tpu.memory_space<vmem>>, %arg13: memref<16x32xf32, #tpu.memory_space<vmem>>, %arg14: memref<16x32xf32, #tpu.memory_space<vmem>>, %arg15: memref<16x32xf32, #tpu.memory_space<vmem>>) attributes {dimension_semantics = [#tpu.dimension_semantics<parallel>, #tpu.dimension_semantics<parallel>, #tpu.dimension_semantics<arbitrary>], iteration_bounds = array<i64: 1, 1, 1>, scalar_prefetch = 0 : i64, scratch_operands = 3 : i64, tpu.core_type = #tpu.core_type<tc>, window_params = [{transform_indices = @transform_0, window_bounds = array<i64: 16, 32>}, {transform_indices = @transform_1, window_bounds = array<i64: 32, 32>}, {transform_indices = @transform_2, window_bounds = array<i64: 32, 32>}, {transform_indices = @transform_3, window_bounds = array<i64: 32, 32>}, {transform_indices = @transform_4, window_bounds = array<i64: 1, 32>}, {transform_indices = @transform_5, window_bounds = array<i64: 1, 32>}, {transform_indices = @transform_6, window_bounds = array<i64: 1, 32>}, {transform_indices = @transform_7, window_bounds = array<i64: 16, 32>}, {transform_indices = @transform_8, window_bounds = array<i64: 16, 32>}, {transform_indices = @transform_9, window_bounds = array<i64: 16, 32>}]} {
    %c0_i32 = arith.constant 0 : i32
    %0 = arith.cmpi eq, %arg2, %c0_i32 : i32
    %1 = arith.extui %0 : i1 to i32
    %c0_i32_0 = arith.constant 0 : i32
    %2 = arith.cmpi ne, %1, %c0_i32_0 : i32
    scf.if %2 {
      %cst_24 = arith.constant 0.000000e+00 : f32
      %22 = vector.broadcast %cst_24 : f32 to vector<16x32xf32>
      %c0_25 = arith.constant 0 : index
      %c0_26 = arith.constant 0 : index
      %23 = vector.load %arg13[%c0_25, %c0_26] : memref<16x32xf32, #tpu.memory_space<vmem>>, vector<16x32xf32>
      tpu.vector_store %arg13[%c0_25, %c0_26], %22 {strides = array<i32>} : memref<16x32xf32, #tpu.memory_space<vmem>>, vector<16x32xf32>,
      %cst_27 = arith.constant 0.000000e+00 : f32
      %24 = vector.broadcast %cst_27 : f32 to vector<16x32xf32>
      %c0_28 = arith.constant 0 : index
      %c0_29 = arith.constant 0 : index
      %25 = vector.load %arg14[%c0_28, %c0_29] : memref<16x32xf32, #tpu.memory_space<vmem>>, vector<16x32xf32>
      tpu.vector_store %arg14[%c0_28, %c0_29], %24 {strides = array<i32>} : memref<16x32xf32, #tpu.memory_space<vmem>>, vector<16x32xf32>,
      %cst_30 = arith.constant 0.000000e+00 : f32
      %26 = vector.broadcast %cst_30 : f32 to vector<16x32xf32>
      %c0_31 = arith.constant 0 : index
      %c0_32 = arith.constant 0 : index
      %27 = vector.load %arg15[%c0_31, %c0_32] : memref<16x32xf32, #tpu.memory_space<vmem>>, vector<16x32xf32>
      tpu.vector_store %arg15[%c0_31, %c0_32], %26 {strides = array<i32>} : memref<16x32xf32, #tpu.memory_space<vmem>>, vector<16x32xf32>,
    } else {
    }
    %c0 = arith.constant 0 : index
    %c0_1 = arith.constant 0 : index
    %3 = vector.load %arg3[%c0, %c0_1] : memref<16x32xbf16, #tpu.memory_space<vmem>>, vector<16x32xbf16>
    %c0_2 = arith.constant 0 : index
    %c0_3 = arith.constant 0 : index
    %4 = vector.load %arg13[%c0_2, %c0_3] : memref<16x32xf32, #tpu.memory_space<vmem>>, vector<16x32xf32>
    %c0_4 = arith.constant 0 : index
    %c0_5 = arith.constant 0 : index
    %5 = vector.load %arg4[%c0_4, %c0_5] : memref<32x32xbf16, #tpu.memory_space<vmem>>, vector<32x32xbf16>
    %cst = arith.constant dense<0.000000e+00> : vector<16x32xf32>
    %6 = tpu.matmul %3, %5, %cst {dimension_numbers = #tpu.dot_dimension_numbers<[1], [0], [0], [1], [0, 0, 1, 1], [], []>} : vector<16x32xbf16>, vector<32x32xbf16>, vector<16x32xf32> -> vector<16x32xf32>
    %7 = arith.addf %4, %6 : vector<16x32xf32>
    %c0_6 = arith.constant 0 : index
    %c0_7 = arith.constant 0 : index
    %8 = vector.load %arg13[%c0_6, %c0_7] : memref<16x32xf32, #tpu.memory_space<vmem>>, vector<16x32xf32>
    tpu.vector_store %arg13[%c0_6, %c0_7], %7 {strides = array<i32>} : memref<16x32xf32, #tpu.memory_space<vmem>>, vector<16x32xf32>,
    %c0_8 = arith.constant 0 : index
    %c0_9 = arith.constant 0 : index
    %9 = vector.load %arg14[%c0_8, %c0_9] : memref<16x32xf32, #tpu.memory_space<vmem>>, vector<16x32xf32>
    %c0_10 = arith.constant 0 : index
    %c0_11 = arith.constant 0 : index
    %10 = vector.load %arg5[%c0_10, %c0_11] : memref<32x32xbf16, #tpu.memory_space<vmem>>, vector<32x32xbf16>
    %cst_12 = arith.constant dense<0.000000e+00> : vector<16x32xf32>
    %11 = tpu.matmul %3, %10, %cst_12 {dimension_numbers = #tpu.dot_dimension_numbers<[1], [0], [0], [1], [0, 0, 1, 1], [], []>} : vector<16x32xbf16>, vector<32x32xbf16>, vector<16x32xf32> -> vector<16x32xf32>
    %12 = arith.addf %9, %11 : vector<16x32xf32>
    %c0_13 = arith.constant 0 : index
    %c0_14 = arith.constant 0 : index
    %13 = vector.load %arg14[%c0_13, %c0_14] : memref<16x32xf32, #tpu.memory_space<vmem>>, vector<16x32xf32>
    tpu.vector_store %arg14[%c0_13, %c0_14], %12 {strides = array<i32>} : memref<16x32xf32, #tpu.memory_space<vmem>>, vector<16x32xf32>,
    %c0_15 = arith.constant 0 : index
    %c0_16 = arith.constant 0 : index
    %14 = vector.load %arg15[%c0_15, %c0_16] : memref<16x32xf32, #tpu.memory_space<vmem>>, vector<16x32xf32>
    %c0_17 = arith.constant 0 : index
    %c0_18 = arith.constant 0 : index
    %15 = vector.load %arg6[%c0_17, %c0_18] : memref<32x32xbf16, #tpu.memory_space<vmem>>, vector<32x32xbf16>
    %cst_19 = arith.constant dense<0.000000e+00> : vector<16x32xf32>
    %16 = tpu.matmul %3, %15, %cst_19 {dimension_numbers = #tpu.dot_dimension_numbers<[1], [0], [0], [1], [0, 0, 1, 1], [], []>} : vector<16x32xbf16>, vector<32x32xbf16>, vector<16x32xf32> -> vector<16x32xf32>
    %17 = arith.addf %14, %16 : vector<16x32xf32>
    %c0_20 = arith.constant 0 : index
    %c0_21 = arith.constant 0 : index
    %18 = vector.load %arg15[%c0_20, %c0_21] : memref<16x32xf32, #tpu.memory_space<vmem>>, vector<16x32xf32>
    tpu.vector_store %arg15[%c0_20, %c0_21], %17 {strides = array<i32>} : memref<16x32xf32, #tpu.memory_space<vmem>>, vector<16x32xf32>,
    %c0_i32_22 = arith.constant 0 : i32
    %19 = arith.cmpi eq, %arg2, %c0_i32_22 : i32
    %20 = arith.extui %19 : i1 to i32
    %c0_i32_23 = arith.constant 0 : i32
    %21 = arith.cmpi ne, %20, %c0_i32_23 : i32
    scf.if %21 {
      %c0_24 = arith.constant 0 : index
      %c0_25 = arith.constant 0 : index
      %22 = vector.load %arg13[%c0_24, %c0_25] : memref<16x32xf32, #tpu.memory_space<vmem>>, vector<16x32xf32>
      %c0_26 = arith.constant 0 : index
      %c0_27 = arith.constant 0 : index
      %23 = vector.load %arg7[%c0_26, %c0_27] : memref<1x32xf32, #tpu.memory_space<vmem>>, vector<1x32xf32>
      %24 = vector.broadcast %23 : vector<1x32xf32> to vector<16x32xf32>
      %25 = arith.addf %22, %24 : vector<16x32xf32>
      %26 = arith.truncf %25 : vector<16x32xf32> to vector<16x32xbf16>
      %c0_28 = arith.constant 0 : index
      %c0_29 = arith.constant 0 : index
      %27 = vector.load %arg10[%c0_28, %c0_29] : memref<16x32xbf16, #tpu.memory_space<vmem>>, vector<16x32xbf16>
      tpu.vector_store %arg10[%c0_28, %c0_29], %26 {strides = array<i32>} : memref<16x32xbf16, #tpu.memory_space<vmem>>, vector<16x32xbf16>,
      %c0_30 = arith.constant 0 : index
      %c0_31 = arith.constant 0 : index
      %28 = vector.load %arg14[%c0_30, %c0_31] : memref<16x32xf32, #tpu.memory_space<vmem>>, vector<16x32xf32>
      %c0_32 = arith.constant 0 : index
      %c0_33 = arith.constant 0 : index
      %29 = vector.load %arg8[%c0_32, %c0_33] : memref<1x32xf32, #tpu.memory_space<vmem>>, vector<1x32xf32>
      %30 = vector.broadcast %29 : vector<1x32xf32> to vector<16x32xf32>
      %31 = arith.addf %28, %30 : vector<16x32xf32>
      %32 = arith.truncf %31 : vector<16x32xf32> to vector<16x32xbf16>
      %c0_34 = arith.constant 0 : index
      %c0_35 = arith.constant 0 : index
      %33 = vector.load %arg11[%c0_34, %c0_35] : memref<16x32xbf16, #tpu.memory_space<vmem>>, vector<16x32xbf16>
      tpu.vector_store %arg11[%c0_34, %c0_35], %32 {strides = array<i32>} : memref<16x32xbf16, #tpu.memory_space<vmem>>, vector<16x32xbf16>,
      %c0_36 = arith.constant 0 : index
      %c0_37 = arith.constant 0 : index
      %34 = vector.load %arg15[%c0_36, %c0_37] : memref<16x32xf32, #tpu.memory_space<vmem>>, vector<16x32xf32>
      %c0_38 = arith.constant 0 : index
      %c0_39 = arith.constant 0 : index
      %35 = vector.load %arg9[%c0_38, %c0_39] : memref<1x32xf32, #tpu.memory_space<vmem>>, vector<1x32xf32>
      %36 = vector.broadcast %35 : vector<1x32xf32> to vector<16x32xf32>
      %37 = arith.addf %34, %36 : vector<16x32xf32>
      %38 = arith.truncf %37 : vector<16x32xf32> to vector<16x32xbf16>
      %c0_40 = arith.constant 0 : index
      %c0_41 = arith.constant 0 : index
      %39 = vector.load %arg12[%c0_40, %c0_41] : memref<16x32xbf16, #tpu.memory_space<vmem>>, vector<16x32xbf16>
      tpu.vector_store %arg12[%c0_40, %c0_41], %38 {strides = array<i32>} : memref<16x32xbf16, #tpu.memory_space<vmem>>, vector<16x32xbf16>,
    } else {
    }
    return
  }
  func.func @transform_0(%arg0: i32, %arg1: i32, %arg2: i32) -> (i32, i32) {
    %c0_i32 = arith.constant 0 : i32
    return %arg0, %arg2 : i32, i32
  }
  func.func @transform_1(%arg0: i32, %arg1: i32, %arg2: i32) -> (i32, i32) {
    %c0_i32 = arith.constant 0 : i32
    return %arg2, %arg1 : i32, i32
  }
  func.func @transform_2(%arg0: i32, %arg1: i32, %arg2: i32) -> (i32, i32) {
    %c0_i32 = arith.constant 0 : i32
    return %arg2, %arg1 : i32, i32
  }
  func.func @transform_3(%arg0: i32, %arg1: i32, %arg2: i32) -> (i32, i32) {
    %c0_i32 = arith.constant 0 : i32
    return %arg2, %arg1 : i32, i32
  }
  func.func @transform_4(%arg0: i32, %arg1: i32, %arg2: i32) -> (i32, i32) {
    %c0_i32 = arith.constant 0 : i32
    %c0_i32_0 = arith.constant 0 : i32
    return %c0_i32, %arg1 : i32, i32
  }
  func.func @transform_5(%arg0: i32, %arg1: i32, %arg2: i32) -> (i32, i32) {
    %c0_i32 = arith.constant 0 : i32
    %c0_i32_0 = arith.constant 0 : i32
    return %c0_i32, %arg1 : i32, i32
  }
  func.func @transform_6(%arg0: i32, %arg1: i32, %arg2: i32) -> (i32, i32) {
    %c0_i32 = arith.constant 0 : i32
    %c0_i32_0 = arith.constant 0 : i32
    return %c0_i32, %arg1 : i32, i32
  }
  func.func @transform_7(%arg0: i32, %arg1: i32, %arg2: i32) -> (i32, i32) {
    %c0_i32 = arith.constant 0 : i32
    return %arg0, %arg1 : i32, i32
  }
  func.func @transform_8(%arg0: i32, %arg1: i32, %arg2: i32) -> (i32, i32) {
    %c0_i32 = arith.constant 0 : i32
    return %arg0, %arg1 : i32, i32
  }
  func.func @transform_9(%arg0: i32, %arg1: i32, %arg2: i32) -> (i32, i32) {
    %c0_i32 = arith.constant 0 : i32
    return %arg0, %arg1 : i32, i32
  }
}

</mosaic_0001>

<bundles_post_ra>
// kernel: tpu_custom_call.1
= control target key start
LH: loop header
LB: loop body
LE: loop exit
PB: predicated region body
PF: predicated region fallthrough
CT: control target
= control target key end

     0   :  { %15 = vsyncpa [#allocation6], 0  ;;  %s682_s0 = inlined_call_operand.hbm [shape: bf16[16,32], index: 0, kind: input, shape index: {}]   ;;  %s683_s1 = inlined_call_operand.hbm [shape: bf16[32,32], index: 1, kind: input, shape index: {}]   ;;  %s684_s2 = inlined_call_operand.hbm [shape: bf16[32,32], index: 2, kind: input, shape index: {}]   ;;  %s685_s3 = inlined_call_operand.hbm [shape: bf16[32,32], index: 3, kind: input, shape index: {}]   ;;  %s686_s4 = inlined_call_operand.vmem [shape: f32[1,32], index: 4, kind: input, shape index: {}]   ;;  %s687_s5 = inlined_call_operand.vmem [shape: f32[1,32], index: 5, kind: input, shape index: {}]   ;;  %s688_s6 = inlined_call_operand.vmem [shape: f32[1,32], index: 6, kind: input, shape index: {}]   ;;  %s689_s7 = inlined_call_operand.hbm [shape: bf16[16,32], index: 7, kind: output, shape index: {0}]   ;;  %s690_s8 = inlined_call_operand.hbm [shape: bf16[16,32], index: 8, kind: output, shape index: {1}]   ;;  %s691_s9 = inlined_call_operand.hbm [shape: bf16[16,32], index: 9, kind: output, shape index: {2}]  }
   0x1   :  { %16 = vsyncpa [#allocation9], 0 }
   0x2   :  { %17 = vsyncpa [#allocation12], 0 }
   0x3   :  { %18 = vsyncpa [#allocation7], 0 }
   0x4   :  { %19 = vsyncpa [#allocation15], 0  ;;  %s37_s11 = sshll.u32 %s683_s1, 4  ;;  %s550_s12 = smov [#allocation8]   ;;  %s38_s11 = int_to_ptr.hbm [resolvable:$true] %s37_s11 }
   0x5   :  { %s39_s13 = sshll.u32 %s550_s12, 4  ;;  %s24_s16 = sshll.u32 %s682_s0, 4  ;;  %s40_s13 = int_to_ptr.vmem [resolvable:$true] %s39_s13  ;;  %s25_s16 = int_to_ptr.hbm [resolvable:$true] %s24_s16 }
   0x6   :  { %s551_s17 = smov 64   ;;  %s552_s18 = smov 4  }
   0x7   :  { %45 = dma.hbm_to_vmem [thread:$0]  %s38_s11, 256, %s40_s13, [#allocation9], %s551_s17, %s551_s17, %s552_s18  }
   0x8   :  { %s553_s19 = smov [#allocation5]   ;;  %s50_s1 = sshll.u32 %s684_s2, 4  ;;  %s51_s1 = int_to_ptr.hbm [resolvable:$true] %s50_s1 }
   0x9   :  { %s26_s20 = sshll.u32 %s553_s19, 4  ;;  %s63_s24 = sshll.u32 %s685_s3, 4  ;;  %s27_s20 = int_to_ptr.vmem [resolvable:$true] %s26_s20  ;;  %s64_s24 = int_to_ptr.hbm [resolvable:$true] %s63_s24 }
   0xa   :  { %32 = dma.hbm_to_vmem [thread:$0]  %s25_s16, 128, %s27_s20, [#allocation6], %s551_s17, %s551_s17, %s552_s18  }
   0xb   :  { %s554_s25 = smov [#allocation10]   ;;  %s555_s27 = smov [#allocation11]  }
   0xc   :  { %s52_s26 = sshll.u32 %s554_s25, 4  ;;  %s65_s2 = sshll.u32 %s555_s27, 4  ;;  %s53_s26 = int_to_ptr.vmem [resolvable:$true] %s52_s26  ;;  %s66_s2 = int_to_ptr.vmem [resolvable:$true] %s65_s2 }
   0xd   :  { %58 = dma.hbm_to_vmem [thread:$0]  %s51_s1, 256, %s53_s26, [#allocation9], %s551_s17, %s551_s17, %s552_s18  }
   0xe   :  { %71 = dma.hbm_to_vmem [thread:$0]  %s64_s24, 256, %s66_s2, [#allocation12], %s551_s17, %s551_s17, %s552_s18  }
   0xf   :  { %540 = dma.done.wait [#allocation6], 128  }
  0x10   :  { %541 = vsyncadd [#allocation6], 4294967168 }
  0x11   :  { %542 = dma.done.wait [#allocation9], 512  }
  0x12   :  { %543 = vsyncadd [#allocation9], 4294966784 }
  0x13   :  { %544 = dma.done.wait [#allocation12], 256  }
  0x14   :  { %545 = vsyncadd [#allocation12], 4294967040  ;;  %vm99_vm0 = vcmask 261120   ;;  %v556_v0 = vmov 0.0   ;;  %v354_v1 = vld [vmem:[#allocation8 + $0x8] sm:$0xff]  ;;  %v356_v2 = vld [vmem:[#allocation10 + $0x8] sm:$0xff] }
  0x15   :  { %100 = vst.msk [vmem:[#allocation2] sm:$0xff] %vm99_vm0, %v556_v0  ;;  %v358_v3 = vld [vmem:[#allocation11 + $0x8] sm:$0xff]  ;;  %141 = vmatpush.bf16.msra.mxu0 %v354_v1  ;;  %177 = vmatpush.bf16.msra.mxu1 %v356_v2  ;;  %v353_v4 = vld [vmem:[#allocation8] sm:$0xff]  ;;  %v355_v5 = vld [vmem:[#allocation10] sm:$0xff]  ;;  %vm238_vm1 = vcmask 257024   ;;  %s271_s14 = sshll.u32 %s689_s7, 4  ;;  %s272_s14 = int_to_ptr.hbm [resolvable:$true] %s271_s14 }
  0x16   :  { %101 = vst.msk [vmem:[#allocation2 + $0x8] sm:$0xff] %vm99_vm0, %v556_v0  ;;  %213 = vmatpush.bf16.msra.mxu2 %v358_v3  ;;  %v357_v6 = vld [vmem:[#allocation11] sm:$0xff]  ;;  %v352_v7 = vld [vmem:[#allocation5] sm:$0xff]  ;;  %v370_v18 = vld [vmem:[%s686_s4] ss:$0 sm:$0xff]  ;;  %s558_s15 = smov [#allocation14]  }
  0x17   :  { %102 = vst.msk [vmem:[#allocation3] sm:$0xff] %vm99_vm0, %v556_v0  ;;  %v369_v22 = vld [vmem:[%s687_s5] ss:$0 sm:$0xff]  ;;  %s557_s5 = smov [#allocation13]   ;;  %s284_s20 = sshll.u32 %s690_s8, 4  ;;  %s285_s20 = int_to_ptr.hbm [resolvable:$true] %s284_s20 }
  0x18   :  { %103 = vst.msk [vmem:[#allocation3 + $0x8] sm:$0xff] %vm99_vm0, %v556_v0  ;;  %v371_v32 = vld [vmem:[%s688_s6] ss:$0 sm:$0xff]  ;;  %s269_s11 = sshll.u32 %s557_s5, 4  ;;  %s282_s6 = sshll.u32 %s558_s15, 4  ;;  %s270_s11 = int_to_ptr.vmem [resolvable:$true] %s269_s11  ;;  %s283_s6 = int_to_ptr.vmem [resolvable:$true] %s282_s6 }
  0x19   :  { %104 = vst.msk [vmem:[#allocation4] sm:$0xff] %vm99_vm0, %v556_v0  ;;  %142 = vmatpush.bf16.msra.mxu0 %v353_v4  ;;  %178 = vmatpush.bf16.msra.mxu1 %v355_v5  ;;  %s559_s7 = smov [#allocation16]   ;;  %s297_s0 = sshll.u32 %s691_s9, 4  ;;  %s298_s0 = int_to_ptr.hbm [resolvable:$true] %s297_s0 }
  0x1a   :  { %105 = vst.msk [vmem:[#allocation4 + $0x8] sm:$0xff] %vm99_vm0, %v556_v0  ;;  %214 = vmatpush.bf16.msra.mxu2 %v357_v6  ;;  %s295_s21 = sshll.u32 %s559_s7, 4  ;;  %s296_s21 = int_to_ptr.vmem [resolvable:$true] %s295_s21 }
  0x1c   :  { %333 = vmatmul.msk.bf16.vlgmr.msra.gmra.mxu0 %vm99_vm0, %v352_v7  ;;  %342 = vmatmul.msk.bf16.vlgmr.msra.gmra.mxu1 %vm99_vm0, %v352_v7  ;;  %v108_v8 = vld [vmem:[#allocation2] sm:$0xff] }
  0x1d   :  { %351 = vmatmul.msk.bf16.vlgmr.msra.gmra.mxu2 %vm99_vm0, %v352_v7  ;;  %v109_v15 = vld [vmem:[#allocation2 + $0x8] sm:$0xff] }
  0x1e   :  { %v153_v9 = vld [vmem:[#allocation3] sm:$0xff] }
  0x1f   :  { %v154_v16 = vld [vmem:[#allocation3 + $0x8] sm:$0xff] }
  0x20   :  { %v189_v14 = vld [vmem:[#allocation4] sm:$0xff] }
  0x21   :  { %v190_v29 = vld [vmem:[#allocation4 + $0x8] sm:$0xff] }
  0x99   :  { %v144_v10 = vpop.f32.mrf.mxu0  ;;  %v180_v11 = vpop.f32.mrf.mxu1 }
  0x9a   :  { %v149_v12 = vadd.f32 %v144_v10, %v108_v8  ;;  %v185_v13 = vadd.f32 %v180_v11, %v153_v9 }
  0x9c   :  { %151 = vst.msk [vmem:[#allocation2] sm:$0xff] %vm99_vm0, %v149_v12 }
  0x9d   :  { %187 = vst.msk [vmem:[#allocation3] sm:$0xff] %vm99_vm0, %v185_v13 }
  0xa0   :  { %v216_v17 = vpop.f32.mrf.mxu2 }
  0xa1   :  { %v221_v19 = vadd.f32 %v216_v17, %v189_v14  ;;  %v146_v20 = vpop.f32.mrf.mxu0  ;;  %v182_v21 = vpop.f32.mrf.mxu1 }
  0xa2   :  { %v150_v23 = vadd.f32 %v146_v20, %v109_v15  ;;  %v186_v24 = vadd.f32 %v182_v21, %v154_v16 }
  0xa3   :  { %223 = vst.msk [vmem:[#allocation4] sm:$0xff] %vm99_vm0, %v221_v19  ;;  %v228_v25 = vld [vmem:[#allocation2] sm:$0xff] }
  0xa4   :  { %152 = vst.msk [vmem:[#allocation2 + $0x8] sm:$0xff] %vm99_vm0, %v150_v23  ;;  %v241_v26 = vld [vmem:[#allocation3] sm:$0xff]  ;;  %v234_v27 = vadd.f32 %v370_v18, %v228_v25 }
  0xa5   :  { %188 = vst.msk [vmem:[#allocation3 + $0x8] sm:$0xff] %vm99_vm0, %v186_v24  ;;  %v247_v28 = vadd.f32 %v369_v22, %v241_v26 }
  0xa6   :  { %v236_v30 = vpack.c.bf16 %v234_v27, %v234_v27 }
  0xa7   :  { %v249_v31 = vpack.c.bf16 %v247_v28, %v247_v28 }
  0xa8   :  { %v218_v33 = vpop.f32.mrf.mxu2  ;;  %239 = vst.msk [vmem:[#allocation13] sm:$0xf] %vm238_vm1, %v236_v30 }
  0xa9   :  { %v222_v34 = vadd.f32 %v218_v33, %v190_v29  ;;  %251 = vst.msk [vmem:[#allocation14] sm:$0xf] %vm238_vm1, %v249_v31 }
  0xaa   :  { %v253_v35 = vld [vmem:[#allocation4] sm:$0xff] }
  0xab   :  { %224 = vst.msk [vmem:[#allocation4 + $0x8] sm:$0xff] %vm99_vm0, %v222_v34  ;;  %v229_v36 = vld [vmem:[#allocation2 + $0x8] sm:$0xff]  ;;  %v259_v37 = vadd.f32 %v371_v32, %v253_v35 }
  0xac   :  { %v242_v38 = vld [vmem:[#allocation3 + $0x8] sm:$0xff]  ;;  %v235_v39 = vadd.f32 %v370_v18, %v229_v36 }
  0xad   :  { %v248_v40 = vadd.f32 %v369_v22, %v242_v38  ;;  %v261_v41 = vpack.c.bf16 %v259_v37, %v259_v37 }
  0xae   :  { %v237_v42 = vpack.c.bf16 %v235_v39, %v235_v39 }
  0xaf   :  { %v250_v43 = vpack.c.bf16 %v248_v40, %v248_v40  ;;  %263 = vst.msk [vmem:[#allocation16] sm:$0xf] %vm238_vm1, %v261_v41 }
  0xb0   :  { %240 = vst.msk [vmem:[#allocation13 + $0x4] sm:$0xf] %vm238_vm1, %v237_v42 }
  0xb1   :  { %252 = vst.msk [vmem:[#allocation14 + $0x4] sm:$0xf] %vm238_vm1, %v250_v43  ;;  %277 = dma.vmem_to_hbm [thread:$0]  %s270_s11, 128, %s272_s14, [#allocation7], %s551_s17, %s551_s17, %s552_s18  }
  0xb2   :  { %290 = dma.vmem_to_hbm [thread:$0]  %s283_s6, 128, %s285_s20, [#allocation15], %s551_s17, %s551_s17, %s552_s18   ;;  %v254_v44 = vld [vmem:[#allocation4 + $0x8] sm:$0xff] }
  0xb3   :  { %v260_v45 = vadd.f32 %v371_v32, %v254_v44 }
  0xb5   :  { %v262_v46 = vpack.c.bf16 %v260_v45, %v260_v45 }
  0xb7   :  { %264 = vst.msk [vmem:[#allocation16 + $0x4] sm:$0xf] %vm238_vm1, %v262_v46 }
  0xb8   :  { %303 = dma.vmem_to_hbm [thread:$0]  %s296_s21, 128, %s298_s0, [#allocation15], %s551_s17, %s551_s17, %s552_s18  }
  0xb9   :  { %546 = dma.done.wait [#allocation7], 128  }
  0xba   :  { %547 = vsyncadd [#allocation7], 4294967168 }
  0xbb   :  { %548 = dma.done.wait [#allocation15], 256  }
  0xbc   :  { %549 = vsyncadd [#allocation15], 4294967040 }
  0xbd   :  { %316 = vsyncpa [#allocation6], 1 }
  0xbe   :  { %317 = vsyncpa [#allocation9], 1 }
  0xbf   :  { %318 = vsyncpa [#allocation12], 1 }
  0xc0   :  { %319 = vsyncpa [#allocation7], 1 }
  0xc1   :  { %320 = vsyncpa [#allocation15], 1 }

</bundles_post_ra>
